<compile_context>
chip_gen: v7x
topology: tpu7x:2x2x1
jax: 0.10.0
libtpu: 0.0.40
codegen_flags: <defaults>
</compile_context>

<pallas_src>
import jax
import jax.numpy as jnp
from jax import lax
from jax.experimental import pallas as pl
from jax.experimental.pallas import tpu as pltpu


# --------------------------- Pallas kernel ---------------------------------
def _make_srloss_kernel(w0, w1, requires_gp, n_mse, n_gp):
    """w0/w1: SRLoss weights; n_mse/n_gp: static element counts for the means."""

    def _grad_field(x, row, col, h, w):
        # PyTorch F.pad-shift semantics reproduced with rolls + border masks:
        #   right[j] = x[j+1] (0 at j=W-1), left[j] = x[j-1] (0 at j=0)
        #   top[i]   = x[i-1] (0 at i=0),   bottom[i] = x[i+1] (0 at i=H-1)
        right = jnp.where(col == w - 1, 0.0, pltpu.roll(x, w - 1, axis=1))
        left = jnp.where(col == 0, 0.0, pltpu.roll(x, 1, axis=1))
        dx = right - left
        g = dx * dx
        top = jnp.where(row == 0, 0.0, pltpu.roll(x, 1, axis=0))
        bottom = jnp.where(row == h - 1, 0.0, pltpu.roll(x, h - 1, axis=0))
        dy = top - bottom
        g = g + dy * dy
        return 0.5 * jnp.sqrt(g + 1e-6)

    def kernel(sr_ref, hr_ref, out_ref, acc_ref):
        c = pl.program_id(1)
        nc = pl.num_programs(1)

        # Per-batch accumulators (reset at the first channel of every b).
        @pl.when(c == 0)
        def _init():
            acc_ref[0] = jnp.float32(0.0)  # sum of squared diffs
            acc_ref[1] = jnp.float32(0.0)  # sum of |grad_sr - grad_hr|

        sr = sr_ref[...].astype(jnp.float32)  # (H, W)
        hr = hr_ref[...].astype(jnp.float32)

        diff = sr - hr
        acc_ref[0] += jnp.sum(diff * diff)

        if requires_gp:
            @pl.when(c < 3)  # gradient profile only uses the first 3 channels
            def _gp():
                h, w = sr.shape
                row = lax.broadcasted_iota(jnp.int32, (h, w), 0)
                col = lax.broadcasted_iota(jnp.int32, (h, w), 1)
                g_sr = _grad_field(sr, row, col, h, w)
                g_hr = _grad_field(hr, row, col, h, w)
                acc_ref[1] += jnp.sum(jnp.abs(g_sr - g_hr))

        # Per-batch weighted contribution; wrapper sums over B.
        @pl.when(c == nc - 1)
        def _finalize():
            if requires_gp:
                contrib = acc_ref[0] * (w0 / n_mse) + acc_ref[1] * (w1 / n_gp)
            else:
                contrib = acc_ref[0] * (1.0 / n_mse)  # plain (unweighted) MSE
            out_ref[...] = jnp.full((1, 1), contrib, dtype=jnp.float32)

    return kernel


# --------------------------- wrappers ---------------------------------------
def sr_loss(sr_imgs, hr_imgs, weights=(20.0, 1e-4), requires_gp=True):
    """Pallas implementation of SRLoss.forward. Returns a scalar float32."""
    assert sr_imgs.shape == hr_imgs.shape, (sr_imgs.shape, hr_imgs.shape)
    B, C, H, W = sr_imgs.shape
    n_mse = B * C * H * W
    n_gp_c = min(C, 3)
    do_gp = bool(requires_gp) and n_gp_c > 0
    n_gp = B * n_gp_c * H * W if do_gp else 1

    kernel = _make_srloss_kernel(
        float(weights[0]), float(weights[1]), do_gp, float(n_mse), float(n_gp))

    img_spec = pl.BlockSpec((None, None, H, W), lambda b, c: (b, c, 0, 0))

    partials = pl.pallas_call(
        kernel,
        out_shape=jax.ShapeDtypeStruct((B, 1, 1), jnp.float32),
        grid_spec=pltpu.PrefetchScalarGridSpec(
            num_scalar_prefetch=0,
            grid=(B, C),
            in_specs=[img_spec, img_spec],
            out_specs=pl.BlockSpec((None, 1, 1), lambda b, c: (b, 0, 0)),
            scratch_shapes=[pltpu.SMEM((2,), jnp.float32)],
        ),
        compiler_params=pltpu.CompilerParams(
            # batch blocks are independent -> shardable across TCs (v7x);
            # channel axis is the running reduction -> sequential.
            dimension_semantics=("parallel", "arbitrary")),
    )(sr_imgs, hr_imgs)

    # Tiny wrapper-side reduction over B per-batch partial losses.
    return jnp.sum(partials)


def multitask_loss(sr_imgs, hr_imgs, init_weights=(1.0,), loss_types=("sr",),
                   sr_loss_weights=(20.0, 1e-4), sr_requires_gp=True):
    """Matches MultitaskLoss.forward for learn_weights=False, loss_types=['sr']."""
    losses = []
    loss_dict = {}
    if "sr" in loss_types:
        l_sr = sr_loss(sr_imgs, hr_imgs, sr_loss_weights, sr_requires_gp)
        losses.append(l_sr)
        loss_dict["sr"] = lax.stop_gradient(l_sr)
    # TODO(synk): 'rec' branch (nn.CTCLoss dynamic-programming loss) and the
    # learn_weights UncertaintyWeightLoss path are not kernelized here.
    total = jnp.float32(0.0)
    weight_dict = {}
    for idx, t in enumerate(loss_types):
        total = total + jnp.float32(init_weights[idx]) * losses[idx]
        weight_dict[t] = jnp.float32(init_weights[idx])
    return total, loss_dict, weight_dict


# ------------------------- pure-JAX reference -------------------------------
def _ref_generate_gradient_field(img):
    b, c, h, w = img.shape
    p = jnp.pad(img, ((0, 0), (0, 0), (1, 1), (1, 1)))
    right = p[:, :, 1:h + 1, 2:w + 2]
    left = p[:, :, 1:h + 1, 0:w]
    top = p[:, :, 0:h, 1:w + 1]
    bottom = p[:, :, 2:h + 2, 1:w + 1]
    return 0.5 * jnp.sqrt((right - left) ** 2 + (top - bottom) ** 2 + 1e-6)


def _ref_sr_loss(sr, hr, weights=(20.0, 1e-4), requires_gp=True):
    mse = jnp.mean((sr - hr) ** 2)
    if not requires_gp:
        return mse
    gp = jnp.mean(jnp.abs(_ref_generate_gradient_field(sr[:, :3]) -
                          _ref_generate_gradient_field(hr[:, :3])))
    return weights[0] * mse + weights[1] * gp


if __name__ == "__main__":
    key = jax.random.PRNGKey(0)
    k1, k2 = jax.random.split(key)
    # batch=2, channels=4, spatial=16x16 (first 3 channels used by GP loss)
    sr = jax.random.uniform(k1, (2, 4, 16, 16), dtype=jnp.float32)
    hr = jax.random.uniform(k2, (2, 4, 16, 16), dtype=jnp.float32)

    total, loss_dict, weight_dict = multitask_loss(sr, hr, init_weights=(1.0,))
    total = jax.block_until_ready(total)

    ref_sr = _ref_sr_loss(sr, hr)
    assert jnp.allclose(loss_dict["sr"], ref_sr, rtol=1e-5, atol=1e-6), (
        loss_dict["sr"], ref_sr)
    assert jnp.allclose(total, ref_sr, rtol=1e-5, atol=1e-6), (total, ref_sr)

    # requires_gp=False path (plain MSE, unweighted — matches PyTorch).
    mse_only = jax.block_until_ready(sr_loss(sr, hr, requires_gp=False))
    ref_mse = jnp.mean((sr - hr) ** 2)
    assert jnp.allclose(mse_only, ref_mse, rtol=1e-5, atol=1e-6), (
        mse_only, ref_mse)

    print("KERNEL_OK")
</pallas_src>

<mosaic_0001>
module attributes {stable_mosaic.version = 11 : i64} {
  func.func @kernel(%arg0: i32, %arg1: i32, %arg2: memref<1x1x16x16xf32, #tpu.memory_space<vmem>>, %arg3: memref<1x1x16x16xf32, #tpu.memory_space<vmem>>, %arg4: memref<1x1x1xf32, #tpu.memory_space<vmem>>, %arg5: memref<2xf32, #tpu.memory_space<smem>>) attributes {dimension_semantics = [#tpu.dimension_semantics<parallel>, #tpu.dimension_semantics<arbitrary>], iteration_bounds = array<i64: 2, 4>, scalar_prefetch = 0 : i64, scratch_operands = 1 : i64, tpu.core_type = #tpu.core_type<tc>, window_params = [{transform_indices = @transform_0, window_bounds = array<i64: 1, 1, 16, 16>}, {transform_indices = @transform_1, window_bounds = array<i64: 1, 1, 16, 16>}, {transform_indices = @transform_2, window_bounds = array<i64: 1, 1, 1>}]} {
    %c0_i32 = arith.constant 0 : i32
    %0 = arith.cmpi eq, %arg1, %c0_i32 : i32
    %1 = arith.extui %0 : i1 to i32
    %c0_i32_0 = arith.constant 0 : i32
    %2 = arith.cmpi ne, %1, %c0_i32_0 : i32
    scf.if %2 {
      %cst_13 = arith.constant 0.000000e+00 : f32
      %c0_14 = arith.constant 0 : index
      %22 = memref.load %arg5[%c0_14] : memref<2xf32, #tpu.memory_space<smem>>
      memref.store %cst_13, %arg5[%c0_14] : memref<2xf32, #tpu.memory_space<smem>>
      %cst_15 = arith.constant 0.000000e+00 : f32
      %c1 = arith.constant 1 : index
      %23 = memref.load %arg5[%c1] : memref<2xf32, #tpu.memory_space<smem>>
      memref.store %cst_15, %arg5[%c1] : memref<2xf32, #tpu.memory_space<smem>>
    } else {
    }
    %c0 = arith.constant 0 : index
    %c0_1 = arith.constant 0 : index
    %c0_2 = arith.constant 0 : index
    %c0_3 = arith.constant 0 : index
    %3 = vector.load %arg2[%c0, %c0_1, %c0_2, %c0_3] : memref<1x1x16x16xf32, #tpu.memory_space<vmem>>, vector<1x1x16x16xf32>
    %4 = vector.shape_cast %3 : vector<1x1x16x16xf32> to vector<16x16xf32>
    %c0_4 = arith.constant 0 : index
    %c0_5 = arith.constant 0 : index
    %c0_6 = arith.constant 0 : index
    %c0_7 = arith.constant 0 : index
    %5 = vector.load %arg3[%c0_4, %c0_5, %c0_6, %c0_7] : memref<1x1x16x16xf32, #tpu.memory_space<vmem>>, vector<1x1x16x16xf32>
    %6 = vector.shape_cast %5 : vector<1x1x16x16xf32> to vector<16x16xf32>
    %7 = arith.subf %4, %6 : vector<16x16xf32>
    %c0_8 = arith.constant 0 : index
    %8 = memref.load %arg5[%c0_8] : memref<2xf32, #tpu.memory_space<smem>>
    %9 = arith.mulf %7, %7 : vector<16x16xf32>
    %10 = vector.shape_cast %9 : vector<16x16xf32> to vector<1x16x16xf32>
    %cst = arith.constant dense<0.000000e+00> : vector<1xf32>
    %11 = vector.multi_reduction <add>, %10, %cst [1, 2] : vector<1x16x16xf32> to vector<1xf32>
    %12 = vector.shape_cast %11 : vector<1xf32> to vector<1x1x1xf32>
    %13 = vector.extract %12[0, 0, 0] : f32 from vector<1x1x1xf32>
    %14 = arith.addf %8, %13 : f32
    %c0_9 = arith.constant 0 : index
    %15 = memref.load %arg5[%c0_9] : memref<2xf32, #tpu.memory_space<smem>>
    memref.store %14, %arg5[%c0_9] : memref<2xf32, #tpu.memory_space<smem>>
    %c3_i32 = arith.constant 3 : i32
    %16 = arith.cmpi slt, %arg1, %c3_i32 : i32
    %17 = arith.extui %16 : i1 to i32
    %c0_i32_10 = arith.constant 0 : i32
    %18 = arith.cmpi ne, %17, %c0_i32_10 : i32
    scf.if %18 {
      %22 = tpu.iota {dimensions = array<i32: 0>} : vector<16x16xi32>
      %23 = tpu.iota {dimensions = array<i32: 1>} : vector<16x16xi32>
      %c15_i32 = arith.constant 15 : i32
      %24 = vector.broadcast %c15_i32 : i32 to vector<16x16xi32>
      %25 = arith.cmpi eq, %23, %24 : vector<16x16xi32>
      %c15_i32_13 = arith.constant 15 : i32
      %26 = tpu.dynamic_rotate %4 by %c15_i32_13 dim 1 : vector<16x16xf32>, i32 -> vector<16x16xf32>
      %cst_14 = arith.constant 0.000000e+00 : f32
      %27 = vector.broadcast %cst_14 : f32 to vector<16x16xf32>
      %28 = arith.select %25, %27, %26 : vector<16x16xi1>, vector<16x16xf32>
      %c0_i32_15 = arith.constant 0 : i32
      %29 = vector.broadcast %c0_i32_15 : i32 to vector<16x16xi32>
      %30 = arith.cmpi eq, %23, %29 : vector<16x16xi32>
      %c1_i32 = arith.constant 1 : i32
      %31 = tpu.dynamic_rotate %4 by %c1_i32 dim 1 : vector<16x16xf32>, i32 -> vector<16x16xf32>
      %cst_16 = arith.constant 0.000000e+00 : f32
      %32 = vector.broadcast %cst_16 : f32 to vector<16x16xf32>
      %33 = arith.select %30, %32, %31 : vector<16x16xi1>, vector<16x16xf32>
      %34 = arith.subf %28, %33 : vector<16x16xf32>
      %35 = arith.mulf %34, %34 : vector<16x16xf32>
      %c0_i32_17 = arith.constant 0 : i32
      %36 = vector.broadcast %c0_i32_17 : i32 to vector<16x16xi32>
      %37 = arith.cmpi eq, %22, %36 : vector<16x16xi32>
      %c1_i32_18 = arith.constant 1 : i32
      %38 = tpu.dynamic_rotate %4 by %c1_i32_18 dim 0 : vector<16x16xf32>, i32 -> vector<16x16xf32>
      %cst_19 = arith.constant 0.000000e+00 : f32
      %39 = vector.broadcast %cst_19 : f32 to vector<16x16xf32>
      %40 = arith.select %37, %39, %38 : vector<16x16xi1>, vector<16x16xf32>
      %c15_i32_20 = arith.constant 15 : i32
      %41 = vector.broadcast %c15_i32_20 : i32 to vector<16x16xi32>
      %42 = arith.cmpi eq, %22, %41 : vector<16x16xi32>
      %c15_i32_21 = arith.constant 15 : i32
      %43 = tpu.dynamic_rotate %4 by %c15_i32_21 dim 0 : vector<16x16xf32>, i32 -> vector<16x16xf32>
      %cst_22 = arith.constant 0.000000e+00 : f32
      %44 = vector.broadcast %cst_22 : f32 to vector<16x16xf32>
      %45 = arith.select %42, %44, %43 : vector<16x16xi1>, vector<16x16xf32>
      %46 = arith.subf %40, %45 : vector<16x16xf32>
      %47 = arith.mulf %46, %46 : vector<16x16xf32>
      %48 = arith.addf %35, %47 : vector<16x16xf32>
      %cst_23 = arith.constant 9.99999997E-7 : f32
      %49 = vector.broadcast %cst_23 : f32 to vector<16x16xf32>
      %50 = arith.addf %48, %49 : vector<16x16xf32>
      %51 = math.sqrt %50 : vector<16x16xf32>
      %cst_24 = arith.constant 5.000000e-01 : f32
      %52 = vector.broadcast %cst_24 : f32 to vector<16x16xf32>
      %53 = arith.mulf %52, %51 : vector<16x16xf32>
      %c15_i32_25 = arith.constant 15 : i32
      %54 = vector.broadcast %c15_i32_25 : i32 to vector<16x16xi32>
      %55 = arith.cmpi eq, %23, %54 : vector<16x16xi32>
      %c15_i32_26 = arith.constant 15 : i32
      %56 = tpu.dynamic_rotate %6 by %c15_i32_26 dim 1 : vector<16x16xf32>, i32 -> vector<16x16xf32>
      %cst_27 = arith.constant 0.000000e+00 : f32
      %57 = vector.broadcast %cst_27 : f32 to vector<16x16xf32>
      %58 = arith.select %55, %57, %56 : vector<16x16xi1>, vector<16x16xf32>
      %c0_i32_28 = arith.constant 0 : i32
      %59 = vector.broadcast %c0_i32_28 : i32 to vector<16x16xi32>
      %60 = arith.cmpi eq, %23, %59 : vector<16x16xi32>
      %c1_i32_29 = arith.constant 1 : i32
      %61 = tpu.dynamic_rotate %6 by %c1_i32_29 dim 1 : vector<16x16xf32>, i32 -> vector<16x16xf32>
      %cst_30 = arith.constant 0.000000e+00 : f32
      %62 = vector.broadcast %cst_30 : f32 to vector<16x16xf32>
      %63 = arith.select %60, %62, %61 : vector<16x16xi1>, vector<16x16xf32>
      %64 = arith.subf %58, %63 : vector<16x16xf32>
      %65 = arith.mulf %64, %64 : vector<16x16xf32>
      %c0_i32_31 = arith.constant 0 : i32
      %66 = vector.broadcast %c0_i32_31 : i32 to vector<16x16xi32>
      %67 = arith.cmpi eq, %22, %66 : vector<16x16xi32>
      %c1_i32_32 = arith.constant 1 : i32
      %68 = tpu.dynamic_rotate %6 by %c1_i32_32 dim 0 : vector<16x16xf32>, i32 -> vector<16x16xf32>
      %cst_33 = arith.constant 0.000000e+00 : f32
      %69 = vector.broadcast %cst_33 : f32 to vector<16x16xf32>
      %70 = arith.select %67, %69, %68 : vector<16x16xi1>, vector<16x16xf32>
      %c15_i32_34 = arith.constant 15 : i32
      %71 = vector.broadcast %c15_i32_34 : i32 to vector<16x16xi32>
      %72 = arith.cmpi eq, %22, %71 : vector<16x16xi32>
      %c15_i32_35 = arith.constant 15 : i32
      %73 = tpu.dynamic_rotate %6 by %c15_i32_35 dim 0 : vector<16x16xf32>, i32 -> vector<16x16xf32>
      %cst_36 = arith.constant 0.000000e+00 : f32
      %74 = vector.broadcast %cst_36 : f32 to vector<16x16xf32>
      %75 = arith.select %72, %74, %73 : vector<16x16xi1>, vector<16x16xf32>
      %76 = arith.subf %70, %75 : vector<16x16xf32>
      %77 = arith.mulf %76, %76 : vector<16x16xf32>
      %78 = arith.addf %65, %77 : vector<16x16xf32>
      %cst_37 = arith.constant 9.99999997E-7 : f32
      %79 = vector.broadcast %cst_37 : f32 to vector<16x16xf32>
      %80 = arith.addf %78, %79 : vector<16x16xf32>
      %81 = math.sqrt %80 : vector<16x16xf32>
      %cst_38 = arith.constant 5.000000e-01 : f32
      %82 = vector.broadcast %cst_38 : f32 to vector<16x16xf32>
      %83 = arith.mulf %82, %81 : vector<16x16xf32>
      %c1 = arith.constant 1 : index
      %84 = memref.load %arg5[%c1] : memref<2xf32, #tpu.memory_space<smem>>
      %85 = arith.subf %53, %83 : vector<16x16xf32>
      %86 = math.absf %85 : vector<16x16xf32>
      %87 = vector.shape_cast %86 : vector<16x16xf32> to vector<1x16x16xf32>
      %cst_39 = arith.constant dense<0.000000e+00> : vector<1xf32>
      %88 = vector.multi_reduction <add>, %87, %cst_39 [1, 2] : vector<1x16x16xf32> to vector<1xf32>
      %89 = vector.shape_cast %88 : vector<1xf32> to vector<1x1x1xf32>
      %90 = vector.extract %89[0, 0, 0] : f32 from vector<1x1x1xf32>
      %91 = arith.addf %84, %90 : f32
      %c1_40 = arith.constant 1 : index
      %92 = memref.load %arg5[%c1_40] : memref<2xf32, #tpu.memory_space<smem>>
      memref.store %91, %arg5[%c1_40] : memref<2xf32, #tpu.memory_space<smem>>
    } else {
    }
    %c3_i32_11 = arith.constant 3 : i32
    %19 = arith.cmpi eq, %arg1, %c3_i32_11 : i32
    %20 = arith.extui %19 : i1 to i32
    %c0_i32_12 = arith.constant 0 : i32
    %21 = arith.cmpi ne, %20, %c0_i32_12 : i32
    scf.if %21 {
      %c0_13 = arith.constant 0 : index
      %22 = memref.load %arg5[%c0_13] : memref<2xf32, #tpu.memory_space<smem>>
      %cst_14 = arith.constant 0.009765625 : f32
      %23 = arith.mulf %22, %cst_14 : f32
      %c1 = arith.constant 1 : index
      %24 = memref.load %arg5[%c1] : memref<2xf32, #tpu.memory_space<smem>>
      %cst_15 = arith.constant 6.51041673E-8 : f32
      %25 = arith.mulf %24, %cst_15 : f32
      %26 = arith.addf %23, %25 : f32
      %27 = vector.broadcast %26 : f32 to vector<1x1xf32>
      %c0_16 = arith.constant 0 : index
      %c0_17 = arith.constant 0 : index
      %c0_18 = arith.constant 0 : index
      %28 = vector.load %arg4[%c0_16, %c0_17, %c0_18] : memref<1x1x1xf32, #tpu.memory_space<vmem>>, vector<1x1x1xf32>
      %29 = vector.shape_cast %28 : vector<1x1x1xf32> to vector<1x1xf32>
      %30 = vector.shape_cast %27 : vector<1x1xf32> to vector<1x1x1xf32>
      tpu.vector_store %arg4[%c0_16, %c0_17, %c0_18], %30 {strides = array<i32>} : memref<1x1x1xf32, #tpu.memory_space<vmem>>, vector<1x1x1xf32>,
    } else {
    }
    return
  }
  func.func @transform_0(%arg0: i32, %arg1: i32) -> (i32, i32, i32, i32) {
    %c0_i32 = arith.constant 0 : i32
    %c0_i32_0 = arith.constant 0 : i32
    %c0_i32_1 = arith.constant 0 : i32
    return %arg0, %arg1, %c0_i32, %c0_i32_0 : i32, i32, i32, i32
  }
  func.func @transform_1(%arg0: i32, %arg1: i32) -> (i32, i32, i32, i32) {
    %c0_i32 = arith.constant 0 : i32
    %c0_i32_0 = arith.constant 0 : i32
    %c0_i32_1 = arith.constant 0 : i32
    return %arg0, %arg1, %c0_i32, %c0_i32_0 : i32, i32, i32, i32
  }
  func.func @transform_2(%arg0: i32, %arg1: i32) -> (i32, i32, i32) {
    %c0_i32 = arith.constant 0 : i32
    %c0_i32_0 = arith.constant 0 : i32
    %c0_i32_1 = arith.constant 0 : i32
    return %arg0, %c0_i32, %c0_i32_0 : i32, i32, i32
  }
}

</mosaic_0001>

<bundles_post_ra>
// kernel: tpu_custom_call.1
= control target key start
LH: loop header
LB: loop body
LE: loop exit
PB: predicated region body
PF: predicated region fallthrough
CT: control target
= control target key end

     0   :  { %7 = vsyncpa [#allocation4], 0  ;;  %s1106_s0 = inlined_call_operand.hbm [shape: f32[2,4,16,16], index: 0, kind: input, shape index: {}]   ;;  %s1107_s1 = inlined_call_operand.hbm [shape: f32[2,4,16,16], index: 1, kind: input, shape index: {}]   ;;  %s1108_s2 = inlined_call_operand.vmem [shape: f32[2,1,1], index: 2, kind: output, shape index: {}]  }
   0x1   :  { %9 = vsyncpa [#allocation4 + $0x1], 0 }
   0x2   :  { %10 = vsyncpa [#allocation6], 0 }
   0x3   :  { %12 = vsyncpa [#allocation6 + $0x1], 0  ;;  %s817_s9 = smov 0   ;;  %s819_s10 = smov 0  }
   0x4   :  { %s821_s11 = smov 0   ;;  %s823_s12 = smov 0  }
   0x5   :  { %s825_s13 = smov 0   ;;  %s827_s14 = smov 0  }
   0x6   :  { %s829_s15 = smov 0   ;;  %s831_s16 = smov 0  }
   0x7 LB: > { %s542_s17 = sadd.s32 4294967295, %s792_s16   ;;  %s27_s18 = sadd.s32 1, %s784_s14  ;;  %s792_s16 = sphi %s831_s16, %s18_s16   ;;  %s788_s15 = sphi %s829_s15, %s1122_s15   ;;  %s784_s14 = sphi %s827_s14, %s1121_s14   ;;  %s780_s13 = sphi %s825_s13, %s1120_s13   ;;  %s776_s12 = sphi %s823_s12, %s1119_s12   ;;  %s772_s11 = sphi %s821_s11, %s1118_s11   ;;  %s768_s10 = sphi %s819_s10, %s1117_s10   ;;  %s764_s9 = sphi %s817_s9, %s1116_s9  }
   0x8   : > { %p28_p0 = scmp.ge.s32.totalorder %s27_s18, 4  ;;  %s30_s19 = sadd.s32 1, %s788_s15 }
   0x9   : > { %s39_s20 = sadd.s32 1, %s772_s11  ;;  %p46_p1 = scmp.ne.s32.totalorder %s772_s11, %s768_s10 }
   0xa   : > { %s1124_s18 = smov (%p28_p0, %s27_s18), 0  ;;  %s1126_s19 = smov (!%p28_p0, %s30_s19), %s788_s15 }
   0xb   : > { %s35_s21 = ssub.s32 %s784_s14, %s1124_s18  ;;  %p47_p2 = scmp.eq.s32.totalorder %s792_s16, 0 }
   0xc   : > { %p32_p3 = scmp.ge.s32.totalorder %s1126_s19, 2  ;;  %p52_p4 = scmp.ne.s32.totalorder %s768_s10, %s764_s9 }
   0xd   : > { %p868_p5 = por %p47_p2, %p46_p1  ;;  %p53_p6 = scmp.eq.s32.totalorder %s542_s17, 0 }
   0xe   : > { %s1128_s19 = smov (%p32_p3, %s1126_s19), 0  ;;  %p582_p8 = scmp.lt.s32.totalorder %s792_s16, 8 }
   0xf   : > { %p874_p7 = por %p53_p6, %p52_p4  ;;  %s34_s24 = ssub.s32 %s788_s15, %s1128_s19 }
  0x10   : > { %s36_s25 = sor.u32 %s35_s21, %s34_s24  ;;  %s882_s26 = sand.u32 1, %s772_s11  }
  0x11   : > { %s1111_s23 = scalar_select %p874_p7, 1, 0 }
  0x12   : > { %p37_p9 = scmp.eq.s32.totalorder %s36_s25, 0  ;;  %s546_s27 = sshll.u32 %s882_s26, 4 }
  0x13   : > { %s547_s28 = sshll.u32 %s784_s14, 1  ;;  %s548_s30 = sshll.u32 %s788_s15, 3 }
  0x14   : > { %s887_s29 = scalar_select %p37_p9, %s772_s11, %s39_s20  }
  0x15   : > { %s890_s3 = sadd.s32 %s548_s30, %s547_s28  ;;  %s134_s4 = scalar_lea.vmem [#allocation3], %s546_s27 }
  0x16   : > { %s143_s5 = sshll.u32 %s134_s4, 4  ;;  %s549_s6 = sshll.u32 %s890_s3, 7  ;;  %s895_s5 = int_to_ptr.vmem [resolvable:$true] %s143_s5 }
  0x17   : > { %s902_s9 = scalar_lea.hbm %s1106_s0, %s549_s6  ;;  %p908_p10 = pnand %p582_p8, %p868_p5 }
  0x18   : > { %s131_s20 = scalar_lea.sflag [#allocation4], %s882_s26  ;;  %s662_s21 = scalar_lea.hbm %s902_s9, 256 }
  0x19   : > { %p663_p12 = scmp.ne.s32.totalorder %s902_s9, %s662_s21  ;;  %p664_p13 = pneg %p908_p10 }
  0x1a   : > { %s667_s25 = scalar_lea.hbm %s1106_s0, 2048  ;;  %p668_p2 = scmp.lt.u32.totalorder %s902_s9, %s1106_s0 }
  0x1b   : > { %p665_p0 = pnand %p664_p13, %p663_p12  ;;  %p669_p3 = scmp.lt.u32.totalorder %s667_s25, %s662_s21 }
  0x1c   : > { %p671_p5 = scmp.lt.u32.totalorder %s662_s21, %s902_s9 }
  0x1d   : > { %p666_p1 = pneg %p665_p0  ;;  %p670_p4 = por %p669_p3, %p668_p2 }
  0x1f   : > { %p672_p6 = por %p671_p5, %p670_p4 }
  0x21   : > { %p673_p8 = pnand %p672_p6, %p666_p1 }
  0x23   : > { %676 = shalt.err (!%p673_p8)
}
  0x24   : > { %s677_s4 = scalar_lea.vmem %s895_s5, 256  ;;  %s794_s7 = smov [#allocation3]  }
  0x25   : > { %p678_p9 = scmp.ne.s32.totalorder %s895_s5, %s677_s4  ;;  %s682_s8 = sshll.u32 %s794_s7, 4  ;;  %s683_s8 = int_to_ptr.vmem [resolvable:$false] %s682_s8 }
  0x26   : > { %s684_s22 = scalar_lea.vmem %s683_s8, 512  ;;  %p685_p11 = scmp.lt.s32.totalorder %s895_s5, %s683_s8 }
  0x27   : > { %p680_p12 = pnand %p678_p9, %p664_p13  ;;  %p686_p2 = scmp.lt.s32.totalorder %s684_s22, %s677_s4 }
  0x29   : > { %p681_p0 = pneg %p680_p12  ;;  %p687_p3 = por %p686_p2, %p685_p11 }
  0x2b   : > { %p688_p4 = pnand %p687_p3, %p681_p0 }
  0x2d   : > { %691 = shalt.err (!%p688_p4)
}
  0x2e   : > { %s795_s21 = smov 128   ;;  %s796_s24 = smov 8  }
  0x2f   : > { %578 = dma.hbm_to_vmem [thread:$0]  (!%p908_p10), %s902_s9, 256, %s895_s5, %s131_s20, %s795_s21, %s795_s21, %s796_s24  }
  0x30   : > { %p174_p11 = scmp.lt.s32.totalorder %s792_s16, 9  ;;  %s950_s30 = scalar_lea.hbm %s1107_s1, %s549_s6 }
  0x31   : > { %p1113_p1 = scmp.ge.s32.totalorder %s792_s16, 1  ;;  %s157_s7 = scalar_lea.vmem [#allocation5], %s546_s27 }
  0x32   : > { %s166_s8 = sshll.u32 %s157_s7, 4  ;;  %s154_s3 = scalar_lea.sflag [#allocation6], %s882_s26  ;;  %s960_s8 = int_to_ptr.vmem [resolvable:$true] %s166_s8 }
  0x33   : > { %p954_p5 = pnand %p1113_p1, %p174_p11  ;;  %s692_s5 = scalar_lea.hbm %s950_s30, 256 }
  0x34   : > { %p693_p6 = scmp.ne.s32.totalorder %s950_s30, %s692_s5  ;;  %s697_s20 = scalar_lea.hbm %s1107_s1, 2048 }
  0x35   : > { %p698_p12 = scmp.lt.u32.totalorder %s950_s30, %s1107_s1  ;;  %p699_p0 = scmp.lt.u32.totalorder %s697_s20, %s692_s5 }
  0x36   : > { %p695_p8 = pnand %p693_p6, %p664_p13  ;;  %p701_p3 = scmp.lt.u32.totalorder %s692_s5, %s950_s30 }
  0x37   : > { %p700_p2 = por %p699_p0, %p698_p12 }
  0x38   : > { %p696_p9 = pneg %p695_p8 }
  0x39   : > { %p702_p4 = por %p701_p3, %p700_p2 }
  0x3b   : > { %p703_p11 = pnand %p702_p4, %p696_p9 }
  0x3d   : > { %706 = shalt.err (!%p703_p11)
}
  0x3e   : > { %s707_s27 = scalar_lea.vmem %s960_s8, 256  ;;  %s797_s28 = smov [#allocation5]  }
  0x3f   : > { %p708_p1 = scmp.ne.s32.totalorder %s960_s8, %s707_s27  ;;  %s712_s7 = sshll.u32 %s797_s28, 4  ;;  %s713_s7 = int_to_ptr.vmem [resolvable:$false] %s712_s7 }
  0x40   : > { %s714_s6 = scalar_lea.vmem %s713_s7, 512  ;;  %p715_p7 = scmp.lt.s32.totalorder %s960_s8, %s713_s7 }
  0x41   : > { %p710_p6 = pnand %p708_p1, %p664_p13  ;;  %p716_p12 = scmp.lt.s32.totalorder %s714_s6, %s707_s27 }
  0x43   : > { %p711_p8 = pneg %p710_p6  ;;  %p717_p0 = por %p716_p12, %p715_p7 }
  0x45   : > { %p718_p2 = pnand %p717_p0, %p711_p8 }
  0x47   : > { %721 = shalt.err (!%p718_p2)
}
  0x48   : > { %581 = dma.hbm_to_vmem [thread:$0]  (!%p908_p10), %s950_s30, 256, %s960_s8, %s154_s3, %s795_s21, %s795_s21, %s796_s24  }
  0x49   : > { %178 = sbr.rel (%p954_p5) target bundleno = 740 (0x2e4), region = 28  ;;  %s180_s5 = sand.u32 (!%p954_p5), 1, %s768_s10  }
  0x4a   : > { %s555_s9 = sshll.u32 (!%p954_p5), %s180_s5, 4  ;;  %s181_s20 = scalar_lea.sflag (!%p954_p5), [#allocation4], %s180_s5 }
  0x4b   : > { %s184_s22 = scalar_lea.vmem (!%p954_p5), [#allocation3], %s555_s9  ;;  %p1115_p7 = scmp.ne.s32.totalorder (!%p954_p5), %s1111_s23, 0 }
  0x50   : > { %755 = dma.done.wait (%p1115_p7), %s181_s20, 256  }
  0x51   : > { %757 = vsyncadd (%p1115_p7), %s181_s20, 4294967040  ;;  %s190_s17 = scalar_lea.sflag [#allocation6], %s180_s5  ;;  %s193_s26 = scalar_lea.vmem [#allocation5], %s555_s9 }
  0x52   : > { %759 = dma.done.wait (%p1115_p7), %s190_s17, 256  }
  0x53   : > { %761 = vsyncadd (%p1115_p7), %s190_s17, 4294967040  ;;  %p217_p10 = scmp.lt.s32.totalorder %s780_s13, 1  ;;  %v1010_v0 = vld [vmem:[%s184_s22] sm:$0xff]  ;;  %v1012_v1 = vld [vmem:[%s184_s22 + $0x8] sm:$0xff]  ;;  %vm237_vm0 = vcmask 130048   ;;  %p583_p13 = scmp.eq.s32.totalorder %s776_s12, 0 }
  0x54   : > { %v1014_v2 = vld [vmem:[%s193_s26] sm:$0xff]  ;;  %v1016_v3 = vld [vmem:[%s193_s26 + $0x8] sm:$0xff]  ;;  %s798_s23 = smov 0.0   ;;  %p558_p5 = scmp.ge.s32.totalorder %s776_s12, 3 }
  0x55   : > { %s1130_s13 = smov (!%p217_p10, %s780_s13), 1  ;;  %v232_v4 = vsub.f32 %v1010_v0, %v1014_v2  ;;  %v233_v5 = vsub.f32 %v1012_v1, %v1016_v3  ;;  %573 = sst [smem:[#allocation2]] (%p583_p13), %s798_s23 }
  0x56   : > { %s219_s30 = scalar_lea.vmem %s1108_s2, %s1130_s13  ;;  %574 = sst [smem:[#allocation2 + $0x1]] (%p583_p13), %s798_s23  ;;  %vm263_vm1 = vcmask (!%p558_p5), 1047680   ;;  %v257_v34 = vlaneseq (!%p558_p5)  ;;  %v301_v36 = vrot.slane (!%p558_p5), %v1010_v0, 7  ;;  %v302_v37 = vrot.slane (!%p558_p5), %v1012_v1, 7 }
  0x57   : > { %v235_v6 = vmul.f32 %v232_v4, %v232_v4  ;;  %v236_v7 = vmul.f32 %v233_v5, %v233_v5  ;;  %s234_s4 = sld [smem:[#allocation2]]  ;;  %s799_s25 = smov (!%p558_p5), 16   ;;  %v310_v38 = vrot.slane (!%p558_p5), %v1010_v0, 1  ;;  %v311_v39 = vrot.slane (!%p558_p5), %v1012_v1, 1 }
  0x58   : > { %341 = vrot.lane.b32.xlu1 (!%p558_p5), %v1014_v2, %s799_s25  ;;  %s800_s27 = smov (!%p558_p5), 127   ;;  %s801_s28 = smov (!%p558_p5), 113   ;;  %v258_v35 = vshrl.u32 (!%p558_p5), %v257_v34, 7  ;;  %v261_v42 = vand.u32 (!%p558_p5), 127, %v257_v34  ;;  %v375_v45 = vrot.slane (!%p558_p5), %v1014_v2, 7  ;;  %v376_v46 = vrot.slane (!%p558_p5), %v1016_v3, 7 }
  0x59   : > { %v238_v8 = vsel %vm237_vm0, %v235_v6, 0.0  ;;  %v239_v9 = vsel %vm237_vm0, %v236_v7, 0.0  ;;  %v381_v50 = vrot.slane (!%p558_p5), %v1014_v2, 1  ;;  %v382_v51 = vrot.slane (!%p558_p5), %v1016_v3, 1  ;;  %s559_s7 = sld [smem:[#allocation2 + $0x1]] (!%p558_p5) }
  0x5a   : > { %v240_v10 = vadd.f32 %v239_v9, %v238_v8  ;;  %vm303_vm2 = vcmp.lt.s32.totalorder (!%p558_p5), %v258_v35, 1  ;;  %vm299_vm3 = vcmp.eq.s32.totalorder (!%p558_p5), %v258_v35, 0  ;;  %vm312_vm4 = vcmp.lt.s32.totalorder (!%p558_p5), %v258_v35, 7 }
  0x5b   : > { %v305_v40 = vsel (!%p558_p5), %vm303_vm2, %v302_v37, %v301_v36  ;;  %v259_v41 = vadd.s32 (!%p558_p5), 8, %v258_v35  ;;  %v313_v44 = vsel (!%p558_p5), %vm312_vm4, %v310_v38, %v311_v39  ;;  %v314_v48 = vsel (!%p558_p5), %vm312_vm4, %v311_v39, %v310_v38 }
  0x5c   : > { %241 = vadd.xlane.f32.xlu0 %v240_v10  ;;  %344 = vrot.lane.b32.xlu1 (!%p558_p5), %v1016_v3, %s799_s25  ;;  %v306_v43 = vsel (!%p558_p5), %vm299_vm3, 0.0, %v305_v40  ;;  %vm262_vm6 = vcmp.eq.s32.totalorder (!%p558_p5), %v261_v42, 15  ;;  %vm286_vm7 = vcmp.eq.s32.totalorder (!%p558_p5), %v261_v42, 0  ;;  %v304_v52 = vsel (!%p558_p5), %vm303_vm2, %v301_v36, %v302_v37 }
  0x5d   : > { %vm309_vm5 = vcmp.eq.s32.totalorder (!%p558_p5), %v259_v41, 15  ;;  %v317_v49 = vsub.f32 (!%p558_p5), %v306_v43, %v313_v44  ;;  %v378_v54 = vsel (!%p558_p5), %vm303_vm2, %v376_v46, %v375_v45  ;;  %v383_v63 = vsel (!%p558_p5), %vm312_vm4, %v381_v50, %v382_v51 }
  0x5e   : > { %v316_v53 = vsel (!%p558_p5), %vm309_vm5, 0.0, %v314_v48  ;;  %v379_v62 = vsel (!%p558_p5), %vm299_vm3, 0.0, %v378_v54  ;;  %v377_v10 = vsel (!%p558_p5), %vm303_vm2, %v375_v45, %v376_v46 }
  0x5f   : > { %v319_v59 = vmul.f32 (!%p558_p5), %v317_v49, %v317_v49  ;;  %v318_v61 = vsub.f32 (!%p558_p5), %v304_v52, %v316_v53  ;;  %v387_v6 = vsub.f32 (!%p558_p5), %v379_v62, %v383_v63 }
  0x61   : > { %v320_v9 = vmul.f32 (!%p558_p5), %v318_v61, %v318_v61 }
  0x72   : > { %264 = vrot.lane.b32.xlu0 (!%p558_p5), %v1010_v0, %s799_s25 }
  0x76   : > { %267 = vrot.lane.b32.xlu0 (!%p558_p5), %v1012_v1, %s799_s25 }
  0xca   : > { %v342_v19 = vpop.permute.xlu1 (!%p558_p5), %341 }
  0xcb   : > { %v343_v21 = vsel (!%p558_p5), %vm263_vm1, %v342_v19, %v1014_v2 }
  0xce   : > { %v345_v23 = vpop.permute.xlu1 (!%p558_p5), %344 }
  0xcf   : > { %v346_v25 = vsel (!%p558_p5), %vm263_vm1, %v345_v23, %v1016_v3 }
  0xe9   : > { %v242_v11 = vpop.xlane.xlu0 %241 }
  0xea   : > { %v243_v12 = vrot.slane %v242_v11, 4 }
  0xec   : > { %v244_v13 = vadd.f32 %v243_v12, %v242_v11 }
  0xed   : > { %v265_v18 = vpop.permute.xlu0 (!%p558_p5), %264 }
  0xee   : > { %v245_v14 = vrot.slane %v244_v13, 2  ;;  %v266_v20 = vsel (!%p558_p5), %vm263_vm1, %v265_v18, %v1010_v0  ;;  %v389_v18 = vmul.f32 (!%p558_p5), %v387_v6, %v387_v6 }
  0xef   : > { %270 = vrot.lane.b32.xlu0 (!%p558_p5), %v266_v20, %s799_s25 }
  0xf0   : > { %v246_v15 = vadd.f32 %v245_v14, %v244_v13 }
  0xf1   : > { %v268_v22 = vpop.permute.xlu0 (!%p558_p5), %267 }
  0xf2   : > { %v247_v16 = vrot.slane %v246_v15, 1  ;;  %v269_v24 = vsel (!%p558_p5), %vm263_vm1, %v268_v22, %v1012_v1 }
  0xf3   : > { %272 = vrot.lane.b32.xlu1 (!%p558_p5), %v269_v24, %s799_s25  ;;  %347 = vrot.lane.b32.xlu0 (!%p558_p5), %v343_v21, %s799_s25 }
  0xf4   : > { %v248_v17 = vadd.f32 %v247_v16, %v246_v15 }
  0xf6   : > { %564 = vpush %v248_v17 }
  0xf7   : > { %349 = vrot.lane.b32.xlu1 (!%p558_p5), %v346_v25, %s799_s25 }
 0x124   : > { %256 = sbr.rel (%p558_p5) target bundleno = 726 (0x2d6), region = 44 }
 0x127   : > { %s565_s8 = spop %564 }
 0x128   : > { %s250_s3 = sadd.f32 %s565_s8, %s234_s4 }
 0x12a   : > { %252 = sst [smem:[#allocation2]] %s250_s3 }
 0x161   : > { %v271_v26 = vpop.permute.xlu0 %270 }
 0x162   : > { %v274_v27 = vsel %vm263_vm1, %v271_v26, %v1010_v0 }
 0x163   : > { %278 = vrot.lane.b32.xlu0 %v274_v27, %s800_s27 }
 0x165   : > { %v273_v28 = vpop.permute.xlu1 %272  ;;  %v348_v29 = vpop.permute.xlu0 %347 }
 0x166   : > { %v275_v30 = vsel %vm263_vm1, %v273_v28, %v1012_v1  ;;  %v351_v31 = vsel %vm263_vm1, %v348_v29, %v1014_v2 }
 0x167   : > { %280 = vrot.lane.b32.xlu1 %v275_v30, %s800_s27  ;;  %287 = vrot.lane.b32.xlu0 %v274_v27, %s801_s28 }
 0x169   : > { %v350_v32 = vpop.permute.xlu1 %349 }
 0x16a   : > { %v352_v33 = vsel %vm263_vm1, %v350_v32, %v1016_v3  ;;  %v384_v3 = vsel %vm312_vm4, %v382_v51, %v381_v50 }
 0x16b   : > { %289 = vrot.lane.b32.xlu1 %v275_v30, %s801_s28  ;;  %355 = vrot.lane.b32.xlu0 %v351_v31, %s800_s27  ;;  %v386_v11 = vsel %vm309_vm5, 0.0, %v384_v3 }
 0x16c   : > { %v388_v21 = vsub.f32 %v377_v10, %v386_v11 }
 0x16e   : > { %v390_v29 = vmul.f32 %v388_v21, %v388_v21 }
 0x16f   : > { %357 = vrot.lane.b32.xlu1 %v352_v33, %s800_s27  ;;  %363 = vrot.lane.b32.xlu0 %v351_v31, %s801_s28 }
 0x173   : > { %365 = vrot.lane.b32.xlu1 %v352_v33, %s801_s28 }
 0x1d5   : > { %v279_v47 = vpop.permute.xlu0 %278 }
 0x1d6   : > { %v284_v57 = vsel %vm262_vm6, 0.0, %v279_v47 }
 0x1d9   : > { %v281_v55 = vpop.permute.xlu1 %280  ;;  %v288_v56 = vpop.permute.xlu0 %287 }
 0x1da   : > { %v293_v58 = vsel %vm286_vm7, 0.0, %v288_v56  ;;  %v285_v4 = vsel %vm262_vm6, 0.0, %v281_v55 }
 0x1db   : > { %v295_v60 = vsub.f32 %v284_v57, %v293_v58 }
 0x1dd   : > { %v297_v0 = vmul.f32 %v295_v60, %v295_v60  ;;  %v290_v1 = vpop.permute.xlu1 %289  ;;  %v356_v2 = vpop.permute.xlu0 %355 }
 0x1de   : > { %v294_v5 = vsel %vm286_vm7, 0.0, %v290_v1  ;;  %v361_v16 = vsel %vm262_vm6, 0.0, %v356_v2 }
 0x1df   : > { %v321_v7 = vadd.f32 %v319_v59, %v297_v0  ;;  %v296_v8 = vsub.f32 %v285_v4, %v294_v5 }
 0x1e1   : > { %v323_v12 = vadd.f32 1e-06, %v321_v7  ;;  %v298_v13 = vmul.f32 %v296_v8, %v296_v8  ;;  %v358_v14 = vpop.permute.xlu1 %357  ;;  %v364_v15 = vpop.permute.xlu0 %363 }
 0x1e2   : > { %v369_v17 = vsel %vm286_vm7, 0.0, %v364_v15  ;;  %v362_v25 = vsel %vm262_vm6, 0.0, %v358_v14 }
 0x1e3   : > { %654 = vrsqrt.f32 %v323_v12  ;;  %v322_v19 = vadd.f32 %v320_v9, %v298_v13  ;;  %v371_v20 = vsub.f32 %v361_v16, %v369_v17  ;;  %vm327_vm8 = vcmp.eq.f32.partialorder %v323_v12, inf }
 0x1e4   : > { %v330_v40 = vand.u32 2147483648, %v323_v12  ;;  %vm329_vm9 = vcmp.eq.f32.partialorder %v323_v12, 0.0 }
 0x1e5   : > { %v324_v22 = vadd.f32 1e-06, %v322_v19  ;;  %v373_v23 = vmul.f32 %v371_v20, %v371_v20  ;;  %v366_v24 = vpop.permute.xlu1 %365 }
 0x1e6   : > { %v370_v26 = vsel %vm286_vm7, 0.0, %v366_v24 }
 0x1e7   : > { %656 = vrsqrt.f32 %v324_v22  ;;  %v391_v27 = vadd.f32 %v389_v18, %v373_v23  ;;  %v372_v28 = vsub.f32 %v362_v25, %v370_v26  ;;  %vm334_vm10 = vcmp.eq.f32.partialorder %v324_v22, inf }
 0x1e8   : > { %v337_v47 = vand.u32 2147483648, %v324_v22  ;;  %vm336_vm13 = vcmp.eq.f32.partialorder %v324_v22, 0.0 }
 0x1e9   : > { %v393_v30 = vadd.f32 1e-06, %v391_v27  ;;  %v374_v31 = vmul.f32 %v372_v28, %v372_v28 }
 0x1eb   : > { %658 = vrsqrt.f32 %v393_v30  ;;  %v392_v32 = vadd.f32 %v390_v29, %v374_v31  ;;  %vm397_vm11 = vcmp.eq.f32.partialorder %v393_v30, inf  ;;  %v400_v43 = vand.u32 2147483648, %v393_v30 }
 0x1ec   : > { %vm399_vm12 = vcmp.eq.f32.partialorder %v393_v30, 0.0 }
 0x1ed   : > { %v655_v33 = vpop.eup %654  ;;  %v394_v34 = vadd.f32 1e-06, %v392_v32 }
 0x1ee   : > { %v326_v35 = vmul.f32 %v655_v33, %v323_v12 }
 0x1ef   : > { %660 = vrsqrt.f32 %v394_v34  ;;  %vm404_vm14 = vcmp.eq.f32.partialorder %v394_v34, inf  ;;  %v407_v53 = vand.u32 2147483648, %v394_v34  ;;  %vm406_vm15 = vcmp.eq.f32.partialorder %v394_v34, 0.0 }
 0x1f0   : > { %v328_v37 = vsel %vm327_vm8, %v323_v12, %v326_v35 }
 0x1f1   : > { %v657_v36 = vpop.eup %656  ;;  %v331_v42 = vsel %vm329_vm9, %v330_v40, %v328_v37 }
 0x1f2   : > { %v333_v38 = vmul.f32 %v657_v36, %v324_v22  ;;  %v339_v49 = vmul.f32 0.5, %v331_v42 }
 0x1f4   : > { %v335_v44 = vsel %vm334_vm10, %v324_v22, %v333_v38 }
 0x1f5   : > { %v659_v39 = vpop.eup %658  ;;  %v338_v52 = vsel %vm336_vm13, %v337_v47, %v335_v44 }
 0x1f6   : > { %v396_v41 = vmul.f32 %v659_v39, %v393_v30  ;;  %v340_v57 = vmul.f32 0.5, %v338_v52 }
 0x1f8   : > { %v398_v45 = vsel %vm397_vm11, %v393_v30, %v396_v41 }
 0x1f9   : > { %v661_v46 = vpop.eup %660  ;;  %v401_v48 = vsel %vm399_vm12, %v400_v43, %v398_v45 }
 0x1fa   : > { %v403_v50 = vmul.f32 %v661_v46, %v394_v34  ;;  %v409_v51 = vmul.f32 0.5, %v401_v48 }
 0x1fc   : > { %v405_v54 = vsel %vm404_vm14, %v394_v34, %v403_v50  ;;  %v412_v55 = vsub.f32 %v339_v49, %v409_v51 }
 0x1fd   : > { %v408_v56 = vsel %vm406_vm15, %v407_v53, %v405_v54 }
 0x1fe   : > { %v410_v58 = vmul.f32 0.5, %v408_v56  ;;  %v414_v60 = vand.u32 2147483647, %v412_v55 }
 0x200   : > { %v413_v59 = vsub.f32 %v340_v57, %v410_v58  ;;  %v416_v62 = vsel %vm237_vm0, %v414_v60, 0.0 }
 0x202   : > { %v415_v61 = vand.u32 2147483647, %v413_v59 }
 0x204   : > { %v417_v63 = vsel %vm237_vm0, %v415_v61, 0.0 }
 0x205   : > { %v418_v0 = vadd.f32 %v417_v63, %v416_v62 }
 0x207   : > { %419 = vadd.xlane.f32.xlu0 %v418_v0 }
 0x294   : > { %v420_v1 = vpop.xlane.xlu0 %419 }
 0x295   : > { %v421_v2 = vrot.slane %v420_v1, 4 }
 0x297   : > { %v422_v3 = vadd.f32 %v421_v2, %v420_v1 }
 0x299   : > { %v423_v4 = vrot.slane %v422_v3, 2 }
 0x29b   : > { %v424_v5 = vadd.f32 %v423_v4, %v422_v3 }
 0x29d   : > { %v425_v6 = vrot.slane %v424_v5, 1 }
 0x29f   : > { %v426_v7 = vadd.f32 %v425_v6, %v424_v5 }
 0x2a1   : > { %566 = vpush %v426_v7 }
 0x2d2   : > { %s567_s6 = spop %566 }
 0x2d3   : > { %s428_s5 = sadd.f32 %s567_s6, %s559_s7 }
 0x2d5   : > { %430 = sst [smem:[#allocation2 + $0x1]] %s428_s5 }
 0x2d6 PF: > { %p560_p9 = scmp.ne.s32.totalorder %s776_s12, 3 }
 0x2d7   : > { %s435_s9 = sld [smem:[#allocation2]] (!%p560_p9)  ;;  %s561_s20 = sld [smem:[#allocation2 + $0x1]] (!%p560_p9)  ;;  %vm441_vm0 = vcmask (!%p560_p9), 0  }
 0x2d8   : > { %434 = sbr.rel (%p560_p9) target bundleno = 740 (0x2e4), region = 48 }
 0x2dd   : > { %s436_s22 = smul.f32 (!%p560_p9), 0.009765625, %s435_s9 }
 0x2de   : > { %s438_s17 = smul.f32 (!%p560_p9), 6.510417e-08, %s561_s20 }
 0x2e0   : > { %s439_s26 = sadd.f32 %s438_s17, %s436_s22 }
 0x2e2   : > { %v440_v8 = vstv %s439_s26 }
 0x2e3   : > { %442 = vst.msk [vmem:[%s219_s30] sm:$0x1] %vm441_vm0, %v440_v8 }
 0x2e4 PF: > { %s18_s16 = sadd.s32 1, %s792_s16   ;;  %s1116_s9 = smov %s768_s10 }
 0x2e5   : > { %p15_p3 = scmp.ge.s32.totalorder %s18_s16, 10   ;;  %s1117_s10 = smov %s772_s11 }
 0x2e6   : > { %s1118_s11 = smov %s887_s29  ;;  %s1119_s12 = smov %s784_s14 }
 0x2e7   : > { %s1120_s13 = smov %s788_s15  ;;  %s1121_s14 = smov %s1124_s18 }
 0x2e8   : > { %s1122_s15 = smov %s1128_s19  ;;  %17 = sbr.rel (!%p15_p3) target bundleno = 7 (0x7), region = 97 }
 0x2ef   :  { %460 = vsyncpa [#allocation4], 1 }
 0x2f0   :  { %462 = vsyncpa [#allocation4 + $0x1], 1 }
 0x2f1   :  { %463 = vsyncpa [#allocation6], 1 }
 0x2f2   :  { %465 = vsyncpa [#allocation6 + $0x1], 1 }

</bundles_post_ra>
